<compile_context>
chip_gen: v5e
topology: v5e:2x2
jax: 0.10.0
libtpu: 0.0.40
codegen_flags: <defaults>
</compile_context>

<pallas_src>
import jax
import jax.numpy as jnp
from jax.experimental import pallas as pl
from jax.experimental.pallas import tpu as pltpu


def bilinear_kernel(x1_ref, x2_ref, w_ref, b_ref, o_ref, acc_ref):
    """Grid = (batch tiles, K tiles over W's column dim).

    x1_ref : (tb, Dp) VMEM  -- resident across the K loop (block idx const in ki)
    x2_ref : (tb, tj) VMEM  -- matching column tile of the second plane
    w_ref  : (Dp, tj) VMEM  -- streamed / double-buffered column tile of W
    b_ref  : (1,)     SMEM  -- bias scalar
    o_ref  : (tb, 1)  VMEM  -- output tile (written only at the last K step)
    acc_ref: (tb, 1)  VMEM f32 scratch -- running sum_j (x1 @ W)[:, j] * x2[:, j]
    """
    ki = pl.program_id(1)
    nk = pl.num_programs(1)

    @pl.when(ki == 0)
    def _init():
        acc_ref[...] = jnp.zeros_like(acc_ref)

    # MXU: (tb, Dp) @ (Dp, tj) with f32 accumulation.
    t = jnp.dot(x1_ref[...], w_ref[...], preferred_element_type=jnp.float32)
    # VPU multiply + XLU lane-reduce folded into every step -> (tb, 1) accumulator.
    acc_ref[...] += jnp.sum(t * x2_ref[...], axis=-1, keepdims=True)

    @pl.when(ki == nk - 1)
    def _finalize():
        o_ref[...] = (acc_ref[...] + b_ref[0]).astype(o_ref.dtype)


def _round_up(n, m):
    return (n + m - 1) // m * m


def _pick_col_tile(dp, budget_bytes=6 * 1024 * 1024):
    """Largest tj = 128*g dividing dp such that a (dp, tj) f32 W tile <= budget."""
    m = dp // 128
    best = 128
    for g in range(1, m + 1):
        if m % g == 0 and dp * 128 * g * 4 <= budget_bytes:
            best = 128 * g
    return best


def _pick_batch_tile(batch, dp, tj, vmem_budget_bytes=40 * 1024 * 1024):
    """Batch tile from a VMEM budget that counts 2x buffering of every block."""
    w_bytes = 2 * dp * tj * 4                       # double-buffered W tile
    per_row = 2 * (dp + tj) * 4 + 3 * 128 * 4       # x1/x2 buffers + out/acc (lane-padded)
    avail = max(vmem_budget_bytes - w_bytes, 0)
    tb_cap = max(8, (avail // per_row) // 8 * 8)
    # Cap at 512: keeps the MXU M dim full and, for large B, leaves nb >= 2 so
    # the "parallel" batch axis can shard across v7x's two TensorCores.
    tb = min(_round_up(batch, 8), 512, tb_cap)
    return max(tb, 8)


def bilinear_module(x, w, bias):
    """x: (B, 2, D), w: (D, D) (= nn.Bilinear weight[0]), bias: (1,)  ->  (B, 1)."""
    B, two, D = x.shape
    assert two == 2 and w.shape == (D, D)

    dp = _round_up(max(D, 128), 128)   # lane-align D (zero padding is exact)
    tj = _pick_col_tile(dp)
    tb = _pick_batch_tile(B, dp, tj)
    bp = _round_up(B, tb)
    nb, nk = bp // tb, dp // tj

    f32 = jnp.float32
    x1 = jnp.zeros((bp, dp), f32).at[:B, :D].set(x[:, 0, :].astype(f32))
    x2 = jnp.zeros((bp, dp), f32).at[:B, :D].set(x[:, 1, :].astype(f32))
    w_p = jnp.zeros((dp, dp), f32).at[:D, :D].set(w.astype(f32))
    b_p = jnp.reshape(bias, (1,)).astype(f32)

    # Explicit scoped-VMEM request: actual usage * 1.5, clamped to a range that
    # is safe on every generation (v5e default is only 16 MiB; v7x physical 64 MiB).
    used = 2 * dp * tj * 4 + tb * (2 * (dp + tj) * 4 + 3 * 128 * 4)
    vmem_limit = int(min(60 << 20, max(32 << 20, used * 3 // 2)))

    grid_spec = pltpu.PrefetchScalarGridSpec(
        num_scalar_prefetch=0,
        grid=(nb, nk),
        in_specs=[
            # x1: full-D row block, constant along ki -> fetched once per batch tile.
            pl.BlockSpec((tb, dp), lambda bi, ki: (bi, 0)),
            # x2: column tile matching the current W tile.
            pl.BlockSpec((tb, tj), lambda bi, ki: (bi, ki)),
            # W: dominant HBM stream, (dp, tj) column tiles, double-buffered.
            pl.BlockSpec((dp, tj), lambda bi, ki: (0, ki)),
            # bias rides in SMEM as a true scalar (no padded VMEM vreg tile).
            pl.BlockSpec(memory_space=pltpu.MemorySpace.SMEM),
        ],
        out_specs=pl.BlockSpec((tb, 1), lambda bi, ki: (bi, 0)),
        scratch_shapes=[pltpu.VMEM((tb, 1), jnp.float32)],
    )

    out = pl.pallas_call(
        bilinear_kernel,
        out_shape=jax.ShapeDtypeStruct((bp, 1), x.dtype),
        grid_spec=grid_spec,
        compiler_params=pltpu.CompilerParams(
            dimension_semantics=("parallel", "arbitrary"),
            vmem_limit_bytes=vmem_limit),
    )(x1, x2, w_p, b_p)
    return out[:B]


if __name__ == "__main__":
    B, D = 8, 32

    key = jax.random.PRNGKey(0)
    kx, kw, kb = jax.random.split(key, 3)

    # Deterministic init (mirrors nn.Bilinear's uniform(-1/sqrt(D), 1/sqrt(D))).
    bound = 1.0 / jnp.sqrt(jnp.float32(D))
    x = jax.random.normal(kx, (B, 2, D), dtype=jnp.float32)
    w = jax.random.uniform(kw, (D, D), minval=-bound, maxval=bound, dtype=jnp.float32)
    bias = jax.random.uniform(kb, (1,), minval=-bound, maxval=bound, dtype=jnp.float32)

    out = jax.block_until_ready(bilinear_module(x, w, bias))

    # Pure-JAX reference check of the bilinear form.
    ref = jnp.einsum("bi,ij,bj->b", x[:, 0, :], w, x[:, 1, :])[:, None] + bias[0]
    assert out.shape == (B, 1)
    assert jnp.allclose(out, ref, atol=1e-5, rtol=1e-5)

    print("KERNEL_OK")
</pallas_src>

<mosaic_0001>
module attributes {stable_mosaic.version = 11 : i64} {
  func.func @bilinear_kernel(%arg0: i32, %arg1: i32, %arg2: memref<8x128xf32, #tpu.memory_space<vmem>>, %arg3: memref<8x128xf32, #tpu.memory_space<vmem>>, %arg4: memref<128x128xf32, #tpu.memory_space<vmem>>, %arg5: memref<1xf32, #tpu.memory_space<smem>>, %arg6: memref<8x1xf32, #tpu.memory_space<vmem>>, %arg7: memref<8x1xf32, #tpu.memory_space<vmem>>) attributes {dimension_semantics = [#tpu.dimension_semantics<parallel>, #tpu.dimension_semantics<arbitrary>], iteration_bounds = array<i64: 1, 1>, scalar_prefetch = 0 : i64, scratch_operands = 1 : i64, tpu.core_type = #tpu.core_type<tc>, window_params = [{transform_indices = @transform_0, window_bounds = array<i64: 8, 128>}, {transform_indices = @transform_1, window_bounds = array<i64: 8, 128>}, {transform_indices = @transform_2, window_bounds = array<i64: 128, 128>}, {transform_indices = @transform_3, window_bounds = array<i64: 1>}, {transform_indices = @transform_4, window_bounds = array<i64: 8, 1>}]} {
    %c0_i32 = arith.constant 0 : i32
    %0 = arith.cmpi eq, %arg1, %c0_i32 : i32
    %1 = arith.extui %0 : i1 to i32
    %c0_i32_0 = arith.constant 0 : i32
    %2 = arith.cmpi ne, %1, %c0_i32_0 : i32
    scf.if %2 {
      %cst_13 = arith.constant 0.000000e+00 : f32
      %16 = vector.broadcast %cst_13 : f32 to vector<8x1xf32>
      %c0_14 = arith.constant 0 : index
      %c0_15 = arith.constant 0 : index
      %17 = vector.load %arg7[%c0_14, %c0_15] : memref<8x1xf32, #tpu.memory_space<vmem>>, vector<8x1xf32>
      tpu.vector_store %arg7[%c0_14, %c0_15], %16 {strides = array<i32>} : memref<8x1xf32, #tpu.memory_space<vmem>>, vector<8x1xf32>,
    } else {
    }
    %c0 = arith.constant 0 : index
    %c0_1 = arith.constant 0 : index
    %3 = vector.load %arg2[%c0, %c0_1] : memref<8x128xf32, #tpu.memory_space<vmem>>, vector<8x128xf32>
    %c0_2 = arith.constant 0 : index
    %c0_3 = arith.constant 0 : index
    %4 = vector.load %arg4[%c0_2, %c0_3] : memref<128x128xf32, #tpu.memory_space<vmem>>, vector<128x128xf32>
    %cst = arith.constant dense<0.000000e+00> : vector<8x128xf32>
    %5 = tpu.matmul %3, %4, %cst {dimension_numbers = #tpu.dot_dimension_numbers<[1], [0], [0], [1], [0, 0, 1, 1], [], []>} : vector<8x128xf32>, vector<128x128xf32>, vector<8x128xf32> -> vector<8x128xf32>
    %c0_4 = arith.constant 0 : index
    %c0_5 = arith.constant 0 : index
    %6 = vector.load %arg7[%c0_4, %c0_5] : memref<8x1xf32, #tpu.memory_space<vmem>>, vector<8x1xf32>
    %c0_6 = arith.constant 0 : index
    %c0_7 = arith.constant 0 : index
    %7 = vector.load %arg3[%c0_6, %c0_7] : memref<8x128xf32, #tpu.memory_space<vmem>>, vector<8x128xf32>
    %8 = arith.mulf %5, %7 : vector<8x128xf32>
    %cst_8 = arith.constant dense<0.000000e+00> : vector<8xf32>
    %9 = vector.multi_reduction <add>, %8, %cst_8 [1] : vector<8x128xf32> to vector<8xf32>
    %10 = vector.shape_cast %9 : vector<8xf32> to vector<8x1xf32>
    %11 = arith.addf %6, %10 : vector<8x1xf32>
    %c0_9 = arith.constant 0 : index
    %c0_10 = arith.constant 0 : index
    %12 = vector.load %arg7[%c0_9, %c0_10] : memref<8x1xf32, #tpu.memory_space<vmem>>, vector<8x1xf32>
    tpu.vector_store %arg7[%c0_9, %c0_10], %11 {strides = array<i32>} : memref<8x1xf32, #tpu.memory_space<vmem>>, vector<8x1xf32>,
    %c0_i32_11 = arith.constant 0 : i32
    %13 = arith.cmpi eq, %arg1, %c0_i32_11 : i32
    %14 = arith.extui %13 : i1 to i32
    %c0_i32_12 = arith.constant 0 : i32
    %15 = arith.cmpi ne, %14, %c0_i32_12 : i32
    scf.if %15 {
      %c0_13 = arith.constant 0 : index
      %c0_14 = arith.constant 0 : index
      %16 = vector.load %arg7[%c0_13, %c0_14] : memref<8x1xf32, #tpu.memory_space<vmem>>, vector<8x1xf32>
      %c0_15 = arith.constant 0 : index
      %17 = memref.load %arg5[%c0_15] : memref<1xf32, #tpu.memory_space<smem>>
      %18 = vector.broadcast %17 : f32 to vector<8x1xf32>
      %19 = arith.addf %16, %18 : vector<8x1xf32>
      %c0_16 = arith.constant 0 : index
      %c0_17 = arith.constant 0 : index
      %20 = vector.load %arg6[%c0_16, %c0_17] : memref<8x1xf32, #tpu.memory_space<vmem>>, vector<8x1xf32>
      tpu.vector_store %arg6[%c0_16, %c0_17], %19 {strides = array<i32>} : memref<8x1xf32, #tpu.memory_space<vmem>>, vector<8x1xf32>,
    } else {
    }
    return
  }
  func.func @transform_0(%arg0: i32, %arg1: i32) -> (i32, i32) {
    %c0_i32 = arith.constant 0 : i32
    %c0_i32_0 = arith.constant 0 : i32
    return %arg0, %c0_i32 : i32, i32
  }
  func.func @transform_1(%arg0: i32, %arg1: i32) -> (i32, i32) {
    %c0_i32 = arith.constant 0 : i32
    return %arg0, %arg1 : i32, i32
  }
  func.func @transform_2(%arg0: i32, %arg1: i32) -> (i32, i32) {
    %c0_i32 = arith.constant 0 : i32
    %c0_i32_0 = arith.constant 0 : i32
    return %c0_i32, %arg1 : i32, i32
  }
  func.func @transform_3(%arg0: i32, %arg1: i32) -> i32 {
    %c0_i32 = arith.constant 0 : i32
    %c0_i32_0 = arith.constant 0 : i32
    return %c0_i32 : i32
  }
  func.func @transform_4(%arg0: i32, %arg1: i32) -> (i32, i32) {
    %c0_i32 = arith.constant 0 : i32
    %c0_i32_0 = arith.constant 0 : i32
    return %arg0, %c0_i32 : i32, i32
  }
}

</mosaic_0001>

<bundles_post_ra>
// kernel: tpu_custom_call.1
= control target key start
LH: loop header
LB: loop body
LE: loop exit
PB: predicated region body
PF: predicated region fallthrough
CT: control target
= control target key end

     0   :  { %10 = vsyncpa [#allocation5], 0  ;;  %s254_s0 = inlined_call_operand.hbm [shape: f32[8,128], index: 0, kind: input, shape index: {}]   ;;  %s255_s1 = inlined_call_operand.hbm [shape: f32[8,128], index: 1, kind: input, shape index: {}]   ;;  %s256_s2 = inlined_call_operand.hbm [shape: f32[128,128], index: 2, kind: input, shape index: {}]   ;;  %s257_s3 = inlined_call_operand.<no memory space> [shape: f32[1], index: 3, kind: input, shape index: {}]   ;;  %s258_s4 = inlined_call_operand.vmem [shape: f32[8,1], index: 4, kind: output, shape index: {}]  }
   0x1   :  { %11 = vsyncpa [#allocation7], 0  ;;  %s28_s17 = sshll.u32 %s255_s1, 4  ;;  %s208_s18 = smov [#allocation6]   ;;  %s29_s17 = int_to_ptr.hbm [resolvable:$true] %s28_s17 }
   0x2   :  { %s30_s19 = sshll.u32 %s208_s18, 4  ;;  %s17_s22 = sshll.u32 %s254_s0, 4  ;;  %s31_s19 = int_to_ptr.vmem [resolvable:$true] %s30_s19  ;;  %s18_s22 = int_to_ptr.hbm [resolvable:$true] %s17_s22 }
   0x3   :  { %33 = dma.hbm_to_vmem [thread:$0]  %s29_s17, 128, %s31_s19, [#allocation7]  }
   0x4   :  { %s209_s23 = smov [#allocation4]   ;;  %s38_s27 = sshll.u32 %s256_s2, 4  ;;  %s39_s27 = int_to_ptr.hbm [resolvable:$true] %s38_s27 }
   0x5   :  { %s19_s24 = sshll.u32 %s209_s23, 4  ;;  %s210_s1 = smov [#allocation8]   ;;  %s20_s24 = int_to_ptr.vmem [resolvable:$true] %s19_s24 }
   0x6   :  { %22 = dma.hbm_to_vmem [thread:$0]  %s18_s22, 128, %s20_s24, [#allocation5]  }
   0x7   :  { %s40_s28 = sshll.u32 %s210_s1, 4  ;;  %s211_s29 = smov 128   ;;  %s41_s28 = int_to_ptr.vmem [resolvable:$true] %s40_s28 }
   0x8   :  { %s212_s30 = smov 8  }
   0x9   :  { %46 = dma.hbm_to_vmem [thread:$0]  %s39_s27, 2048, %s41_s28, [#allocation7], %s211_s29, %s211_s29, %s212_s30  }
   0xa   :  { %204 = dma.done.wait [#allocation5], 128  }
   0xb   :  { %205 = vsyncadd [#allocation5], 4294967168 }
   0xc   :  { %206 = dma.done.wait [#allocation7], 2176  }
   0xd   :  { %207 = vsyncadd [#allocation7], 4294965120  ;;  %v83_v0 = vld [vmem:[#allocation8 + $0x78] sm:$0xff]  ;;  %v82_v1 = vld [vmem:[#allocation8 + $0x70] sm:$0xff]  ;;  %vm65_vm0 = vcmask 7168   ;;  %v213_v17 = vmov 0.0   ;;  %v117_v24 = vstv %s257_s3 }
   0xe   :  { %84 = vmatpush.msra.mxu0 %v83_v0  ;;  %v81_v2 = vld [vmem:[#allocation8 + $0x68] sm:$0xff]  ;;  %v80_v3 = vld [vmem:[#allocation8 + $0x60] sm:$0xff]  ;;  %v79_v4 = vld [vmem:[#allocation8 + $0x58] sm:$0xff]  ;;  %66 = vst.msk [vmem:[#allocation2] sm:$0xff] %vm65_vm0, %v213_v17 }
   0xf   :  { %v78_v5 = vld [vmem:[#allocation8 + $0x50] sm:$0xff]  ;;  %v77_v6 = vld [vmem:[#allocation8 + $0x48] sm:$0xff]  ;;  %v76_v7 = vld [vmem:[#allocation8 + $0x40] sm:$0xff] }
  0x10   :  { %85 = vmatpush.msra.mxu0 %v82_v1  ;;  %v75_v8 = vld [vmem:[#allocation8 + $0x38] sm:$0xff]  ;;  %v74_v9 = vld [vmem:[#allocation8 + $0x30] sm:$0xff]  ;;  %v73_v10 = vld [vmem:[#allocation8 + $0x28] sm:$0xff] }
  0x11   :  { %v72_v11 = vld [vmem:[#allocation8 + $0x20] sm:$0xff]  ;;  %v71_v12 = vld [vmem:[#allocation8 + $0x18] sm:$0xff]  ;;  %v70_v13 = vld [vmem:[#allocation8 + $0x10] sm:$0xff] }
  0x12   :  { %86 = vmatpush.msra.mxu0 %v81_v2  ;;  %v69_v14 = vld [vmem:[#allocation8 + $0x8] sm:$0xff]  ;;  %v68_v15 = vld [vmem:[#allocation8] sm:$0xff]  ;;  %v67_v16 = vld [vmem:[#allocation4] sm:$0xff] }
  0x13   :  { %v105_v18 = vld [vmem:[#allocation6] sm:$0xff] }
  0x14   :  { %87 = vmatpush.msra.mxu0 %v80_v3 }
  0x15   :  { %v104_v21 = vld [vmem:[#allocation2] sm:$0xff] }
  0x16   :  { %88 = vmatpush.msra.mxu0 %v79_v4 }
  0x18   :  { %89 = vmatpush.msra.mxu0 %v78_v5 }
  0x1a   :  { %90 = vmatpush.msra.mxu0 %v77_v6 }
  0x1c   :  { %91 = vmatpush.msra.mxu0 %v76_v7 }
  0x1e   :  { %92 = vmatpush.msra.mxu0 %v75_v8 }
  0x20   :  { %93 = vmatpush.msra.mxu0 %v74_v9 }
  0x22   :  { %94 = vmatpush.msra.mxu0 %v73_v10 }
  0x24   :  { %95 = vmatpush.msra.mxu0 %v72_v11 }
  0x26   :  { %96 = vmatpush.msra.mxu0 %v71_v12 }
  0x28   :  { %97 = vmatpush.msra.mxu0 %v70_v13 }
  0x2a   :  { %98 = vmatpush.msra.mxu0 %v69_v14 }
  0x2c   :  { %99 = vmatpush.msra.mxu0 %v68_v15 }
  0x2d   :  { %100 = vmatmul.f32.vlgmr.msra.gmra.mxu0 %v67_v16 }
  0xaa   :  { %v101_v19 = vpop.f32.mrf.mxu0 }
  0xab   :  { %v106_v20 = vmul.f32 %v105_v18, %v101_v19 }
  0xad   :  { %107 = vadd.xlane.f32.xlu0 %v106_v20 }
 0x120   :  { %v108_v22 = vpop.xlane.xlu0 %107 }
 0x121   :  { %v109_v23 = vadd.f32 %v108_v22, %v104_v21 }
 0x123   :  { %111 = vst.msk [vmem:[#allocation2] sm:$0xff] %vm65_vm0, %v109_v23 }
 0x12a   :  { %v115_v25 = vld [vmem:[#allocation2] sm:$0xff] }
 0x12b   :  { %v118_v26 = vadd.f32 %v117_v24, %v115_v25 }
 0x12d   :  { %119 = vst.msk [vmem:[%s258_s4] sm:$0xff] %vm65_vm0, %v118_v26 }
 0x12e   :  { %124 = vsyncpa [#allocation5], 1 }
 0x12f   :  { %125 = vsyncpa [#allocation7], 1 }

</bundles_post_ra>
